<compile_context>
chip_gen: v7x
topology: tpu7x:2x2x1
jax: 0.10.0
libtpu: 0.0.40
codegen_flags: <defaults>
</compile_context>

<pallas_src>
import functools
import math

import jax
import jax.numpy as jnp
from jax.experimental import pallas as pl
from jax.experimental.pallas import tpu as pltpu


# ----------------------------- Pallas kernels ------------------------------ #
def gcn_fused_kernel(a_ref, d_ref, x_ref, t1_ref, t2_ref, t3_ref,
                     onehot_ref, invc_ref, w_ref, b_ref, out_ref):
    """Whole-forward fused kernel (A resident in VMEM).

    a_ref      : [N, N]   A + I, bf16 (0/1/2 values: exact)
    d_ref      : [N, 1]   deg^-1/2 (0 on padded rows), f32
    x_ref      : [N, 16]  node features, zero-padded past col 7, bf16
    t1/t2/t3   : thetas, bf16 (t1 zero-padded to [16, 64])
    onehot_ref : [Bp, N]  0/1 graph-membership matrix, bf16
    invc_ref   : [Bp, 1]  1 / node-count per graph, f32
    w_ref      : [64,128] linear weight, zero-padded past col 2, f32
    b_ref      : [1, 128] linear bias, zero-padded, f32
    out_ref    : [Bp,128] lane-dense output slab (cols 2.. are padding junk)
    """
    d = d_ref[...]
    d2 = d * d

    # layer 1: u1 = relu(A @ ((d*x) @ t1))        (== d^-1 * A_hat@(x@t1))
    z = jnp.dot((d * x_ref[...]).astype(jnp.bfloat16), t1_ref[...],
                preferred_element_type=jnp.float32)
    u = jnp.maximum(jnp.dot(a_ref[...], z.astype(jnp.bfloat16),
                            preferred_element_type=jnp.float32), 0.0)
    # layer 2: u2 = relu(A @ ((d2*u1) @ t2))
    z = jnp.dot((d2 * u).astype(jnp.bfloat16), t2_ref[...],
                preferred_element_type=jnp.float32)
    u = jnp.maximum(jnp.dot(a_ref[...], z.astype(jnp.bfloat16),
                            preferred_element_type=jnp.float32), 0.0)
    # layer 3: h3 = d * (A @ ((d2*u2) @ t3))
    z = jnp.dot((d2 * u).astype(jnp.bfloat16), t3_ref[...],
                preferred_element_type=jnp.float32)
    h = d * jnp.dot(a_ref[...], z.astype(jnp.bfloat16),
                    preferred_element_type=jnp.float32)

    # global mean pool (bf16 MXU, exact 0/1 onehot) -> relu -> linear
    g = jnp.dot(onehot_ref[...], h.astype(jnp.bfloat16),
                preferred_element_type=jnp.float32) * invc_ref[...]
    g = jnp.maximum(g, 0.0)
    out_ref[...] = jnp.dot(g, w_ref[...],
                           preferred_element_type=jnp.float32) + b_ref[...]


def scale_matmul_kernel(d_ref, x_ref, t_ref, out_ref):
    """z1 = (d * x) @ t1   (layer-1 projection for the row-tiled path)."""
    s = (d_ref[...] * x_ref[...]).astype(jnp.bfloat16)
    out_ref[...] = jnp.dot(s, t_ref[...],
                           preferred_element_type=jnp.float32).astype(jnp.bfloat16)


def gcn_row_block_kernel(a_ref, z_ref, s_ref, t_ref, out_ref, *, relu, apply_theta):
    """One row block of:  out = ((s * relu?(A_block @ z)) @ theta?)  in bf16.

    a_ref : [TM, N] bf16 row block of A+I (streamed, "parallel" grid axis)
    z_ref : [N, 64] bf16 RHS, whole-resident (M-only tiling, K never split)
    s_ref : [TM, 1] f32 per-row scale (d2 at layer boundaries, d after layer 3)
    t_ref : [64,64] bf16 next-layer theta (unused when apply_theta=False)
    """
    y = jnp.dot(a_ref[...], z_ref[...], preferred_element_type=jnp.float32)
    if relu:
        y = jnp.maximum(y, 0.0)
    y = s_ref[...] * y
    if apply_theta:
        y = jnp.dot(y.astype(jnp.bfloat16), t_ref[...],
                    preferred_element_type=jnp.float32)
    out_ref[...] = y.astype(jnp.bfloat16)


def pool_linear_kernel(onehot_ref, h_ref, invc_ref, w_ref, b_ref, out_ref):
    """mean-pool (bf16 MXU) -> relu -> linear, lane-dense [Bp,128] output."""
    g = jnp.dot(onehot_ref[...], h_ref[...],
                preferred_element_type=jnp.float32) * invc_ref[...]
    g = jnp.maximum(g, 0.0)
    out_ref[...] = jnp.dot(g, w_ref[...],
                           preferred_element_type=jnp.float32) + b_ref[...]


# --------------------------------- Helpers --------------------------------- #
def _round_up(v, m):
    return ((v + m - 1) // m) * m


def _vmem_limit_bytes():
    cap = 64 * 1024 * 1024
    try:
        cap = int(pltpu.get_tpu_info().vmem_capacity_bytes)
    except Exception:
        pass
    # ~96 MiB on v5e/v6e (128 MiB physical), ~48 MiB on v7x (64 MiB physical).
    return max(32 * 1024 * 1024, min(cap * 3 // 4, 100 * 1024 * 1024))


def _build_inputs(x, edge_index, batch, num_graphs, n_pad, b_pad):
    """Minimal-glue construction of A+I (bf16), deg^-1/2, padded x, pooling."""
    n, f = x.shape
    diag = jnp.arange(n, dtype=edge_index.dtype)
    # Single bf16 scatter for edges + O(N) diagonal add (PyTorch A + I semantics).
    a_p = jnp.zeros((n_pad, n_pad), jnp.bfloat16)
    a_p = a_p.at[edge_index[0], edge_index[1]].set(1.0)   # dedupes duplicate edges
    a_p = a_p.at[diag, diag].add(1.0)                     # existing self-loops -> 2
    # One bf16 N^2 rowsum with f32 accumulation (matches dense-dedup semantics,
    # which a segment_sum over raw edges would not for duplicate edges).
    deg = jnp.sum(a_p, axis=-1, dtype=jnp.float32)
    d = jnp.where(deg > 0.5, jax.lax.rsqrt(jnp.maximum(deg, 1.0)), 0.0)
    d = d.reshape(n_pad, 1)
    # Feature dim padded 7 -> 16 (bf16 sublane tile).
    x_pad = jnp.zeros((n_pad, 16), jnp.bfloat16).at[:n, :f].set(x.astype(jnp.bfloat16))
    # Pooling: exact 0/1 onehot in bf16, counts kept separately in f32.
    onehot = jnp.zeros((b_pad, n_pad), jnp.bfloat16)
    onehot = onehot.at[:, :n].set(
        (batch[None, :] == jnp.arange(b_pad, dtype=batch.dtype)[:, None]
         ).astype(jnp.bfloat16))
    counts = jnp.sum(onehot, axis=1, keepdims=True, dtype=jnp.float32)
    inv_counts = 1.0 / jnp.maximum(counts, 1.0)
    return a_p, d, x_pad, onehot, inv_counts


def _pad_params(params):
    t1, t2, t3, w, b = params
    t1_p = jnp.zeros((16, 64), jnp.bfloat16).at[: t1.shape[0], :].set(
        t1.astype(jnp.bfloat16))
    w_p = jnp.zeros((64, 128), jnp.float32).at[:, : w.shape[1]].set(w)
    b_p = jnp.zeros((1, 128), jnp.float32).at[0, : b.shape[0]].set(b)
    return t1_p, t2.astype(jnp.bfloat16), t3.astype(jnp.bfloat16), w_p, b_p


# --------------------------------- Wrapper ---------------------------------- #
def gcn_forward(x, edge_index, batch, num_graphs, params, *,
                row_block=512, force_tiled=False):
    """x: [N,7] f32, edge_index: [2,E] i32, batch: [N] i32 -> [num_graphs, 2]."""
    n = x.shape[0]
    b_pad = max(8, _round_up(num_graphs, 8))
    vmem_limit = _vmem_limit_bytes()
    t1_p, t2_b, t3_b, w_p, b_p = _pad_params(params)
    vmem = pl.BlockSpec(memory_space=pltpu.MemorySpace.VMEM)

    # --- path selection: resident-A fused call while A (+ activations) fits --- #
    n8 = _round_up(n, 8)
    fused_bytes = 2 * n8 * n8 + 2 * b_pad * n8 + 8 * 4 * n8 * 64
    use_fused = (not force_tiled) and fused_bytes <= vmem_limit // 2

    if use_fused:
        n_pad = n8
        a_p, d, x_pad, onehot, inv_counts = _build_inputs(
            x, edge_index, batch, num_graphs, n_pad, b_pad)
        flops = (3 * 2 * n_pad * n_pad * 64 + 2 * n_pad * 16 * 64
                 + 2 * 2 * n_pad * 64 * 64 + 2 * b_pad * n_pad * 64
                 + 2 * b_pad * 64 * 128)
        bytes_accessed = (2 * n_pad * n_pad + 2 * n_pad * 16 + 4 * n_pad
                          + 2 * (16 * 64 + 2 * 64 * 64) + 2 * b_pad * n_pad
                          + 4 * b_pad + 4 * 64 * 128 + 4 * 128 + 4 * b_pad * 128)
        out = pl.pallas_call(
            gcn_fused_kernel,
            out_shape=jax.ShapeDtypeStruct((b_pad, 128), jnp.float32),
            in_specs=[vmem] * 10,
            out_specs=vmem,
            compiler_params=pltpu.CompilerParams(vmem_limit_bytes=vmem_limit),
            cost_estimate=pl.CostEstimate(flops=int(flops), transcendentals=0,
                                          bytes_accessed=int(bytes_accessed)),
        )(a_p, d, x_pad, t1_p, t2_b, t3_b, onehot, inv_counts, w_p, b_p)
        return out[:num_graphs, :2]

    # --- row-tiled streaming path (large N / v7x 64 MiB VMEM, or forced) ----- #
    tm = _round_up(max(16, min(row_block, _round_up(n, 16))), 16)
    n_pad = _round_up(n, tm)
    a_p, d, x_pad, onehot, inv_counts = _build_inputs(
        x, edge_index, batch, num_graphs, n_pad, b_pad)
    d2 = d * d
    cp_small = pltpu.CompilerParams(vmem_limit_bytes=vmem_limit)
    cp_grid = pltpu.CompilerParams(dimension_semantics=("parallel",),
                                   vmem_limit_bytes=vmem_limit)

    # layer-1 projection: z1 = (d * x) @ t1   (tiny dense call)
    z = pl.pallas_call(
        scale_matmul_kernel,
        out_shape=jax.ShapeDtypeStruct((n_pad, 64), jnp.bfloat16),
        in_specs=[vmem] * 3, out_specs=vmem,
        compiler_params=cp_small,
    )(d, x_pad, t1_p)

    def row_tiled(z_in, scale, theta, relu, apply_theta):
        kern = functools.partial(gcn_row_block_kernel,
                                 relu=relu, apply_theta=apply_theta)
        flops = 2 * n_pad * n_pad * 64 + (2 * n_pad * 64 * 64 if apply_theta else 0)
        bytes_accessed = 2 * n_pad * n_pad + 4 * n_pad * 64 + 4 * n_pad + 2 * 64 * 64
        return pl.pallas_call(
            kern,
            out_shape=jax.ShapeDtypeStruct((n_pad, 64), jnp.bfloat16),
            grid=(n_pad // tm,),
            in_specs=[
                pl.BlockSpec((tm, n_pad), lambda i: (i, 0)),   # A row block (streamed)
                pl.BlockSpec((n_pad, 64), lambda i: (0, 0)),   # z: whole-resident
                pl.BlockSpec((tm, 1), lambda i: (i, 0)),       # per-row scale
                pl.BlockSpec((64, 64), lambda i: (0, 0)),      # theta
            ],
            out_specs=pl.BlockSpec((tm, 64), lambda i: (i, 0)),
            compiler_params=cp_grid,
            cost_estimate=pl.CostEstimate(flops=int(flops), transcendentals=0,
                                          bytes_accessed=int(bytes_accessed)),
        )(a_p, z_in, scale, theta)

    z = row_tiled(z, d2, t2_b, relu=True, apply_theta=True)    # (d2*relu(A@z1))@t2
    z = row_tiled(z, d2, t3_b, relu=True, apply_theta=True)    # (d2*relu(A@z2))@t3
    h = row_tiled(z, d, t3_b, relu=False, apply_theta=False)   # d*(A@z3)  (theta unused)

    out = pl.pallas_call(
        pool_linear_kernel,
        out_shape=jax.ShapeDtypeStruct((b_pad, 128), jnp.float32),
        in_specs=[vmem] * 5, out_specs=vmem,
        compiler_params=cp_small,
    )(onehot, h, inv_counts, w_p, b_p)
    return out[:num_graphs, :2]


# --------------------------- Pure-JAX reference ----------------------------- #
def gcn_reference(x, edge_index, batch, num_graphs, params):
    n = x.shape[0]
    adj = jnp.zeros((n, n), jnp.float32).at[edge_index[0], edge_index[1]].set(1.0)
    a_p = adj + jnp.eye(n, dtype=jnp.float32)
    d = 1.0 / jnp.sqrt(jnp.sum(a_p, axis=-1))
    a_hat = d[:, None] * a_p * d[None, :]
    t1, t2, t3, w, b = params
    h = jnp.maximum(a_hat @ (x @ t1), 0.0)
    h = jnp.maximum(a_hat @ (h @ t2), 0.0)
    h = a_hat @ (h @ t3)
    onehot = (batch[None, :] == jnp.arange(num_graphs)[:, None]).astype(jnp.float32)
    pool = onehot / jnp.maximum(jnp.sum(onehot, axis=1, keepdims=True), 1.0)
    g = jnp.maximum(pool @ h, 0.0)
    return g @ w + b


# --------------------------- Deterministic params --------------------------- #
def init_params(key):
    k1, k2, k3, k4, k5 = jax.random.split(key, 5)

    def gcn_theta(k, in_c, out_c):
        stdv = 1.0 / math.sqrt(out_c)
        return jax.random.uniform(k, (in_c, out_c), jnp.float32, -stdv, stdv)

    t1 = gcn_theta(k1, 7, 64)
    t2 = gcn_theta(k2, 64, 64)
    t3 = gcn_theta(k3, 64, 64)
    bound = 1.0 / math.sqrt(64)
    w = jax.random.uniform(k4, (64, 2), jnp.float32, -bound, bound)
    b = jax.random.uniform(k5, (2,), jnp.float32, -bound, bound)
    return (t1, t2, t3, w, b)


# ----------------------------------- Main ------------------------------------ #
if __name__ == "__main__":
    key = jax.random.PRNGKey(0)
    kp, kx1, ke1, kx2, ke2 = jax.random.split(key, 5)
    params = init_params(kp)

    # Test 1: small batch through the fused resident-A path (MUTAG-like sizes).
    n1, e1, g1 = 8, 16, 2
    x1 = jax.random.normal(kx1, (n1, 7), jnp.float32)
    ei1 = jax.random.randint(ke1, (2, e1), 0, n1, dtype=jnp.int32)
    b1 = jnp.array([0, 0, 0, 0, 1, 1, 1, 1], dtype=jnp.int32)
    out1 = jax.block_until_ready(gcn_forward(x1, ei1, b1, g1, params))
    ref1 = gcn_reference(x1, ei1, b1, g1, params)
    assert out1.shape == (g1, 2)
    assert jnp.allclose(out1, ref1, rtol=5e-2, atol=5e-2), (out1, ref1)

    # Test 2: force the row-tiled streaming path (grid over A row blocks,
    # exercises node padding + "parallel" row axis).
    n2, e2, g2 = 160, 400, 4
    x2 = jax.random.normal(kx2, (n2, 7), jnp.float32)
    ei2 = jax.random.randint(ke2, (2, e2), 0, n2, dtype=jnp.int32)
    b2 = jnp.repeat(jnp.arange(g2, dtype=jnp.int32), n2 // g2)
    out2 = jax.block_until_ready(
        gcn_forward(x2, ei2, b2, g2, params, row_block=64, force_tiled=True))
    ref2 = gcn_reference(x2, ei2, b2, g2, params)
    assert out2.shape == (g2, 2)
    assert jnp.allclose(out2, ref2, rtol=5e-2, atol=5e-2), (out2, ref2)

    # TODO(synk): the edge_index -> dense adjacency scatter stays in XLA glue
    # (no clean in-kernel scatter); it is now a single bf16 scatter + rowsum.
    print("KERNEL_OK")
</pallas_src>

<mosaic_0001>
module attributes {stable_mosaic.version = 11 : i64} {
  func.func @gcn_fused_kernel(%arg0: memref<8x8xbf16, #tpu.memory_space<vmem>>, %arg1: memref<8x1xf32, #tpu.memory_space<vmem>>, %arg2: memref<8x16xbf16, #tpu.memory_space<vmem>>, %arg3: memref<16x64xbf16, #tpu.memory_space<vmem>>, %arg4: memref<64x64xbf16, #tpu.memory_space<vmem>>, %arg5: memref<64x64xbf16, #tpu.memory_space<vmem>>, %arg6: memref<8x8xbf16, #tpu.memory_space<vmem>>, %arg7: memref<8x1xf32, #tpu.memory_space<vmem>>, %arg8: memref<64x128xf32, #tpu.memory_space<vmem>>, %arg9: memref<1x128xf32, #tpu.memory_space<vmem>>, %arg10: memref<8x128xf32, #tpu.memory_space<vmem>>) attributes {dimension_semantics = [], scalar_prefetch = 0 : i64, scratch_operands = 0 : i64, tpu.core_type = #tpu.core_type<tc>} {
    %c0 = arith.constant 0 : index
    %c0_0 = arith.constant 0 : index
    %0 = vector.load %arg1[%c0, %c0_0] : memref<8x1xf32, #tpu.memory_space<vmem>>, vector<8x1xf32>
    %1 = arith.mulf %0, %0 : vector<8x1xf32>
    %c0_1 = arith.constant 0 : index
    %c0_2 = arith.constant 0 : index
    %2 = vector.load %arg2[%c0_1, %c0_2] : memref<8x16xbf16, #tpu.memory_space<vmem>>, vector<8x16xbf16>
    %3 = arith.extf %2 : vector<8x16xbf16> to vector<8x16xf32>
    %4 = vector.broadcast %0 : vector<8x1xf32> to vector<8x16xf32>
    %5 = arith.mulf %4, %3 : vector<8x16xf32>
    %6 = arith.truncf %5 : vector<8x16xf32> to vector<8x16xbf16>
    %c0_3 = arith.constant 0 : index
    %c0_4 = arith.constant 0 : index
    %7 = vector.load %arg3[%c0_3, %c0_4] : memref<16x64xbf16, #tpu.memory_space<vmem>>, vector<16x64xbf16>
    %cst = arith.constant dense<0.000000e+00> : vector<8x64xf32>
    %8 = tpu.matmul %6, %7, %cst {dimension_numbers = #tpu.dot_dimension_numbers<[1], [0], [0], [1], [0, 0, 1, 1], [], []>} : vector<8x16xbf16>, vector<16x64xbf16>, vector<8x64xf32> -> vector<8x64xf32>
    %c0_5 = arith.constant 0 : index
    %c0_6 = arith.constant 0 : index
    %9 = vector.load %arg0[%c0_5, %c0_6] : memref<8x8xbf16, #tpu.memory_space<vmem>>, vector<8x8xbf16>
    %10 = arith.truncf %8 : vector<8x64xf32> to vector<8x64xbf16>
    %cst_7 = arith.constant dense<0.000000e+00> : vector<8x64xf32>
    %11 = tpu.matmul %9, %10, %cst_7 {dimension_numbers = #tpu.dot_dimension_numbers<[1], [0], [0], [1], [0, 0, 1, 1], [], []>} : vector<8x8xbf16>, vector<8x64xbf16>, vector<8x64xf32> -> vector<8x64xf32>
    %cst_8 = arith.constant 0.000000e+00 : f32
    %12 = vector.broadcast %cst_8 : f32 to vector<8x64xf32>
    %13 = arith.maximumf %11, %12 : vector<8x64xf32>
    %14 = vector.broadcast %1 : vector<8x1xf32> to vector<8x64xf32>
    %15 = arith.mulf %14, %13 : vector<8x64xf32>
    %16 = arith.truncf %15 : vector<8x64xf32> to vector<8x64xbf16>
    %c0_9 = arith.constant 0 : index
    %c0_10 = arith.constant 0 : index
    %17 = vector.load %arg4[%c0_9, %c0_10] : memref<64x64xbf16, #tpu.memory_space<vmem>>, vector<64x64xbf16>
    %cst_11 = arith.constant dense<0.000000e+00> : vector<8x64xf32>
    %18 = tpu.matmul %16, %17, %cst_11 {dimension_numbers = #tpu.dot_dimension_numbers<[1], [0], [0], [1], [0, 0, 1, 1], [], []>} : vector<8x64xbf16>, vector<64x64xbf16>, vector<8x64xf32> -> vector<8x64xf32>
    %c0_12 = arith.constant 0 : index
    %c0_13 = arith.constant 0 : index
    %19 = vector.load %arg0[%c0_12, %c0_13] : memref<8x8xbf16, #tpu.memory_space<vmem>>, vector<8x8xbf16>
    %20 = arith.truncf %18 : vector<8x64xf32> to vector<8x64xbf16>
    %cst_14 = arith.constant dense<0.000000e+00> : vector<8x64xf32>
    %21 = tpu.matmul %19, %20, %cst_14 {dimension_numbers = #tpu.dot_dimension_numbers<[1], [0], [0], [1], [0, 0, 1, 1], [], []>} : vector<8x8xbf16>, vector<8x64xbf16>, vector<8x64xf32> -> vector<8x64xf32>
    %cst_15 = arith.constant 0.000000e+00 : f32
    %22 = vector.broadcast %cst_15 : f32 to vector<8x64xf32>
    %23 = arith.maximumf %21, %22 : vector<8x64xf32>
    %24 = vector.broadcast %1 : vector<8x1xf32> to vector<8x64xf32>
    %25 = arith.mulf %24, %23 : vector<8x64xf32>
    %26 = arith.truncf %25 : vector<8x64xf32> to vector<8x64xbf16>
    %c0_16 = arith.constant 0 : index
    %c0_17 = arith.constant 0 : index
    %27 = vector.load %arg5[%c0_16, %c0_17] : memref<64x64xbf16, #tpu.memory_space<vmem>>, vector<64x64xbf16>
    %cst_18 = arith.constant dense<0.000000e+00> : vector<8x64xf32>
    %28 = tpu.matmul %26, %27, %cst_18 {dimension_numbers = #tpu.dot_dimension_numbers<[1], [0], [0], [1], [0, 0, 1, 1], [], []>} : vector<8x64xbf16>, vector<64x64xbf16>, vector<8x64xf32> -> vector<8x64xf32>
    %c0_19 = arith.constant 0 : index
    %c0_20 = arith.constant 0 : index
    %29 = vector.load %arg0[%c0_19, %c0_20] : memref<8x8xbf16, #tpu.memory_space<vmem>>, vector<8x8xbf16>
    %30 = arith.truncf %28 : vector<8x64xf32> to vector<8x64xbf16>
    %cst_21 = arith.constant dense<0.000000e+00> : vector<8x64xf32>
    %31 = tpu.matmul %29, %30, %cst_21 {dimension_numbers = #tpu.dot_dimension_numbers<[1], [0], [0], [1], [0, 0, 1, 1], [], []>} : vector<8x8xbf16>, vector<8x64xbf16>, vector<8x64xf32> -> vector<8x64xf32>
    %32 = vector.broadcast %0 : vector<8x1xf32> to vector<8x64xf32>
    %33 = arith.mulf %32, %31 : vector<8x64xf32>
    %c0_22 = arith.constant 0 : index
    %c0_23 = arith.constant 0 : index
    %34 = vector.load %arg6[%c0_22, %c0_23] : memref<8x8xbf16, #tpu.memory_space<vmem>>, vector<8x8xbf16>
    %35 = arith.truncf %33 : vector<8x64xf32> to vector<8x64xbf16>
    %cst_24 = arith.constant dense<0.000000e+00> : vector<8x64xf32>
    %36 = tpu.matmul %34, %35, %cst_24 {dimension_numbers = #tpu.dot_dimension_numbers<[1], [0], [0], [1], [0, 0, 1, 1], [], []>} : vector<8x8xbf16>, vector<8x64xbf16>, vector<8x64xf32> -> vector<8x64xf32>
    %c0_25 = arith.constant 0 : index
    %c0_26 = arith.constant 0 : index
    %37 = vector.load %arg7[%c0_25, %c0_26] : memref<8x1xf32, #tpu.memory_space<vmem>>, vector<8x1xf32>
    %38 = vector.broadcast %37 : vector<8x1xf32> to vector<8x64xf32>
    %39 = arith.mulf %36, %38 : vector<8x64xf32>
    %cst_27 = arith.constant 0.000000e+00 : f32
    %40 = vector.broadcast %cst_27 : f32 to vector<8x64xf32>
    %41 = arith.maximumf %39, %40 : vector<8x64xf32>
    %c0_28 = arith.constant 0 : index
    %c0_29 = arith.constant 0 : index
    %42 = vector.load %arg8[%c0_28, %c0_29] : memref<64x128xf32, #tpu.memory_space<vmem>>, vector<64x128xf32>
    %cst_30 = arith.constant dense<0.000000e+00> : vector<8x128xf32>
    %43 = tpu.matmul %41, %42, %cst_30 {dimension_numbers = #tpu.dot_dimension_numbers<[1], [0], [0], [1], [0, 0, 1, 1], [], []>} : vector<8x64xf32>, vector<64x128xf32>, vector<8x128xf32> -> vector<8x128xf32>
    %c0_31 = arith.constant 0 : index
    %c0_32 = arith.constant 0 : index
    %44 = vector.load %arg9[%c0_31, %c0_32] : memref<1x128xf32, #tpu.memory_space<vmem>>, vector<1x128xf32>
    %45 = vector.broadcast %44 : vector<1x128xf32> to vector<8x128xf32>
    %46 = arith.addf %43, %45 : vector<8x128xf32>
    %c0_33 = arith.constant 0 : index
    %c0_34 = arith.constant 0 : index
    %47 = vector.load %arg10[%c0_33, %c0_34] : memref<8x128xf32, #tpu.memory_space<vmem>>, vector<8x128xf32>
    tpu.vector_store %arg10[%c0_33, %c0_34], %46 {strides = array<i32>} : memref<8x128xf32, #tpu.memory_space<vmem>>, vector<8x128xf32>,
    return
  }
}

</mosaic_0001>

<bundles_post_ra>
// kernel: tpu_custom_call.1
= control target key start
LH: loop header
LB: loop body
LE: loop exit
PB: predicated region body
PF: predicated region fallthrough
CT: control target
= control target key end

     0   :  { %15 = vsyncpa [#allocation3], 0  ;;  %s1139_s0 = inlined_call_operand.hbm [shape: bf16[8,8], index: 0, kind: input, shape index: {}]   ;;  %s1140_s1 = inlined_call_operand.vmem [shape: f32[8,1], index: 1, kind: input, shape index: {}]   ;;  %s1141_s2 = inlined_call_operand.hbm [shape: bf16[8,16], index: 2, kind: input, shape index: {}]   ;;  %s1142_s3 = inlined_call_operand.hbm [shape: bf16[16,64], index: 3, kind: input, shape index: {}]   ;;  %s1143_s4 = inlined_call_operand.vmem [shape: bf16[64,64], index: 4, kind: input, shape index: {}]   ;;  %s1144_s5 = inlined_call_operand.hbm [shape: bf16[64,64], index: 5, kind: input, shape index: {}]   ;;  %s1145_s6 = inlined_call_operand.vmem [shape: bf16[8,8], index: 6, kind: input, shape index: {}]   ;;  %s1146_s7 = inlined_call_operand.vmem [shape: f32[8,1], index: 7, kind: input, shape index: {}]   ;;  %s1147_s8 = inlined_call_operand.hbm [shape: f32[64,128], index: 8, kind: input, shape index: {}]   ;;  %s1148_s9 = inlined_call_operand.vmem [shape: f32[1,128], index: 9, kind: input, shape index: {}]   ;;  %s1149_s10 = inlined_call_operand.hbm [shape: f32[8,128], index: 10, kind: output, shape index: {}]  }
   0x1   :  { %16 = vsyncpa [#allocation6], 0 }
   0x2   :  { %17 = vsyncpa [#allocation9], 0 }
   0x3   :  { %18 = vsyncpa [#allocation4], 0  ;;  %s924_s13 = smov [#allocation5]   ;;  %s784_s17 = scalar_lea.hbm %s1141_s2, 64 }
   0x4   :  { %s37_s14 = sshll.u32 %s924_s13, 4  ;;  %p785_p0 = scmp.ne.s32.totalorder %s1141_s2, %s784_s17  ;;  %s38_s14 = int_to_ptr.vmem [resolvable:$true] %s37_s14 }
   0x5   :  { %p788_p1 = scmp.lt.u32.totalorder %s784_s17, %s1141_s2 }
   0x7   :  { %p790_p2 = pnand %p788_p1, %p785_p0 }
   0x9   :  { %793 = shalt.err (!%p790_p2)
}
   0xa   :  { %s794_s22 = scalar_lea.vmem %s38_s14, 64  ;;  %p799_p4 = scmp.lt.s32.totalorder %s38_s14, %s38_s14 }
   0xb   :  { %p795_p3 = scmp.ne.s32.totalorder %s38_s14, %s794_s22  ;;  %p800_p5 = scmp.lt.s32.totalorder %s794_s22, %s794_s22 }
   0xd   :  { %p801_p6 = por %p800_p5, %p799_p4 }
   0xf   :  { %p802_p7 = pnand %p801_p6, %p795_p3 }
  0x11   :  { %805 = shalt.err (!%p802_p7)
}
  0x12   :  { %40 = dma.hbm_to_vmem [thread:$0]  %s1141_s2, 64, %s38_s14, [#allocation6]  }
  0x13   :  { %s925_s25 = smov [#allocation8]   ;;  %s926_s27 = smov [#allocation2]  }
  0x14   :  { %s60_s26 = sshll.u32 %s925_s25, 4  ;;  %s25_s28 = sshll.u32 %s926_s27, 4  ;;  %s61_s26 = int_to_ptr.vmem [resolvable:$true] %s60_s26  ;;  %s26_s28 = int_to_ptr.vmem [resolvable:$true] %s25_s28 }
  0x15   :  { %s806_s11 = scalar_lea.hbm %s1144_s5, 512 }
  0x16   :  { %p807_p8 = scmp.ne.s32.totalorder %s1144_s5, %s806_s11  ;;  %p810_p9 = scmp.lt.u32.totalorder %s806_s11, %s1144_s5 }
  0x18   :  { %p812_p10 = pnand %p810_p9, %p807_p8 }
  0x1a   :  { %815 = shalt.err (!%p812_p10)
}
  0x1b   :  { %s816_s2 = scalar_lea.vmem %s61_s26, 512  ;;  %p821_p12 = scmp.lt.s32.totalorder %s61_s26, %s61_s26 }
  0x1c   :  { %p817_p11 = scmp.ne.s32.totalorder %s61_s26, %s816_s2  ;;  %p822_p13 = scmp.lt.s32.totalorder %s816_s2, %s816_s2 }
  0x1e   :  { %p823_p0 = por %p822_p13, %p821_p12 }
  0x20   :  { %p824_p1 = pnand %p823_p0, %p817_p11 }
  0x22   :  { %827 = shalt.err (!%p824_p1)
}
  0x23   :  { %s927_s14 = smov 64   ;;  %s928_s17 = smov 4  }
  0x24   :  { %66 = dma.hbm_to_vmem [thread:$0]  %s1144_s5, 512, %s61_s26, [#allocation9], %s927_s14, %s927_s14, %s928_s17  }
  0x25   :  { %s828_s22 = scalar_lea.hbm %s1139_s0, 64 }
  0x26   :  { %p829_p2 = scmp.ne.s32.totalorder %s1139_s0, %s828_s22  ;;  %p832_p3 = scmp.lt.u32.totalorder %s828_s22, %s1139_s0 }
  0x28   :  { %p834_p4 = pnand %p832_p3, %p829_p2 }
  0x2a   :  { %837 = shalt.err (!%p834_p4)
}
  0x2b   :  { %s838_s29 = scalar_lea.vmem %s26_s28, 64  ;;  %p843_p6 = scmp.lt.s32.totalorder %s26_s28, %s26_s28 }
  0x2c   :  { %p839_p5 = scmp.ne.s32.totalorder %s26_s28, %s838_s29  ;;  %p844_p7 = scmp.lt.s32.totalorder %s838_s29, %s838_s29 }
  0x2e   :  { %p845_p8 = por %p844_p7, %p843_p6 }
  0x30   :  { %p846_p9 = pnand %p845_p8, %p839_p5 }
  0x32   :  { %849 = shalt.err (!%p846_p9)
}
  0x33   :  { %28 = dma.hbm_to_vmem [thread:$0]  %s1139_s0, 64, %s26_s28, [#allocation3]  }
  0x34   :  { %s929_s30 = smov [#allocation7]   ;;  %s930_s12 = smov [#allocation10]  }
  0x35   :  { %s46_s11 = sshll.u32 %s929_s30, 4  ;;  %s76_s13 = sshll.u32 %s930_s12, 4  ;;  %s47_s11 = int_to_ptr.vmem [resolvable:$true] %s46_s11  ;;  %s77_s13 = int_to_ptr.vmem [resolvable:$true] %s76_s13 }
  0x36   :  { %s850_s2 = scalar_lea.hbm %s1142_s3, 128 }
  0x37   :  { %p851_p10 = scmp.ne.s32.totalorder %s1142_s3, %s850_s2  ;;  %p854_p11 = scmp.lt.u32.totalorder %s850_s2, %s1142_s3 }
  0x39   :  { %p856_p12 = pnand %p854_p11, %p851_p10 }
  0x3b   :  { %859 = shalt.err (!%p856_p12)
}
  0x3c   :  { %s860_s0 = scalar_lea.vmem %s47_s11, 128  ;;  %p865_p0 = scmp.lt.s32.totalorder %s47_s11, %s47_s11 }
  0x3d   :  { %p861_p13 = scmp.ne.s32.totalorder %s47_s11, %s860_s0  ;;  %p866_p1 = scmp.lt.s32.totalorder %s860_s0, %s860_s0 }
  0x3f   :  { %p867_p2 = por %p866_p1, %p865_p0 }
  0x41   :  { %p868_p3 = pnand %p867_p2, %p861_p13 }
  0x43   :  { %871 = shalt.err (!%p868_p3)
}
  0x44   :  { %52 = dma.hbm_to_vmem [thread:$0]  %s1142_s3, 128, %s47_s11, [#allocation6], %s927_s14, %s927_s14, %s928_s17  }
  0x45   :  { %s872_s25 = scalar_lea.hbm %s1147_s8, 1024 }
  0x46   :  { %p873_p4 = scmp.ne.s32.totalorder %s1147_s8, %s872_s25  ;;  %p876_p5 = scmp.lt.u32.totalorder %s872_s25, %s1147_s8 }
  0x48   :  { %p878_p6 = pnand %p876_p5, %p873_p4 }
  0x4a   :  { %881 = shalt.err (!%p878_p6)
}
  0x4b   :  { %s882_s30 = scalar_lea.vmem %s77_s13, 1024  ;;  %p887_p8 = scmp.lt.s32.totalorder %s77_s13, %s77_s13 }
  0x4c   :  { %p883_p7 = scmp.ne.s32.totalorder %s77_s13, %s882_s30  ;;  %p888_p9 = scmp.lt.s32.totalorder %s882_s30, %s882_s30 }
  0x4e   :  { %p889_p10 = por %p888_p9, %p887_p8 }
  0x50   :  { %p890_p11 = pnand %p889_p10, %p883_p7 }
  0x52   :  { %893 = shalt.err (!%p890_p11)
}
  0x53   :  { %s931_s3 = smov 128   ;;  %s932_s14 = smov 8  }
  0x54   :  { %82 = dma.hbm_to_vmem [thread:$0]  %s1147_s8, 1024, %s77_s13, [#allocation9], %s931_s3, %s931_s3, %s932_s14  }
  0x55   :  { %916 = dma.done.wait [#allocation3], 64  }
  0x56   :  { %917 = vsyncadd [#allocation3], 4294967232 }
  0x57   :  { %918 = dma.done.wait [#allocation6], 192  }
  0x58   :  { %919 = vsyncadd [#allocation6], 4294967104 }
  0x59   :  { %920 = dma.done.wait [#allocation9], 1536  }
  0x5a   :  { %921 = vsyncadd [#allocation9], 4294965760  ;;  %v933_v0 = vmov 0   ;;  %v101_v1 = vld [vmem:[%s1140_s1] sm:$0xff]  ;;  %v934_v3 = vmov 0.0   ;;  %v775_v4 = vld [vmem:[#allocation7] sm:$0xff]  }
  0x5b   :  { %773 = vset.pattern.permute.xlu0 %v933_v0  ;;  %774 = vset.pattern.permute.xlu1 %v933_v0  ;;  %v102_v2 = vmul.f32 %v101_v1, %v101_v1  ;;  %vm935_vm0 = vmmov 0   ;;  %v103_v5 = vld [vmem:[#allocation5] sm:$0xf]  ;;  %vm120_vm1 = vcmask 130048   ;;  %v777_v11 = vld [vmem:[%s1143_s4 + $0x8] sm:$0xff]   ;;  %vm170_vm2 = vcmask 1043456  }
  0x5c   :  { %107 = vperm.xlu0 %773, %v101_v1   ;;  %674 = vmatprep.subr.bf16.mxu0 %v934_v3  ;;  %v104_v6 = vunpack.c.l.bf16 %v103_v5  ;;  %v776_v10 = vld [vmem:[%s1143_s4] sm:$0xff]   ;;  %vm166_vm3 = vcmask 64512   ;;  %v778_v19 = vld [vmem:[%s1143_s4 + $0x10] sm:$0xff]   ;;  %v779_v20 = vld [vmem:[%s1143_s4 + $0x18] sm:$0xff]   ;;  %vm254_vm4 = vcmask 523264   ;;  %v936_v55 = vmov 0.0|0.0  }
  0x5d   :  { %680 = vmatprep.subr.bf16.mxu1 %v934_v3  ;;  %675 = vmatpush3.bf16.msra.mxu0 %v775_v4  ;;  %v164_v18 = vld [vmem:[#allocation2] sm:$0xf]  ;;  %v780_v35 = vld [vmem:[#allocation8] sm:$0xff]   ;;  %v781_v36 = vld [vmem:[#allocation8 + $0x8] sm:$0xff]   ;;  %s937_s22 = smov [#allocation11]  }
  0x5e   :  { %676 = vmatprep.mubr.msk.bf16.mxu0 %vm935_vm0, %v934_v3  ;;  %682 = vmatprep.mubr.msk.bf16.mxu1 %vm935_vm0, %v934_v3  ;;  %v782_v37 = vld [vmem:[#allocation8 + $0x10] sm:$0xff]   ;;  %v783_v38 = vld [vmem:[#allocation8 + $0x18] sm:$0xff]   ;;  %v521_v53 = vld [vmem:[#allocation10] sm:$0xff]  ;;  %s616_s23 = sshll.u32 %s937_s22, 4  ;;  %s617_s23 = int_to_ptr.vmem [resolvable:$true] %s616_s23 }
  0x5f   :  { %686 = vmatprep.subr.bf16.mxu0 %v934_v3  ;;  %v513_v52 = vld [vmem:[%s1146_s7] sm:$0xff]  ;;  %v522_v54 = vld [vmem:[#allocation10 + $0x8] sm:$0xff]  ;;  %v524_v58 = vld [vmem:[#allocation10 + $0x18] sm:$0xff]  ;;  %s894_s24 = scalar_lea.vmem %s617_s23, 128  ;;  %p899_p13 = scmp.lt.s32.totalorder %s617_s23, %s617_s23 }
  0x60   :  { %217 = vperm.xlu0 %773, %v102_v2   ;;  %516 = vperm.xlu1 %774, %v513_v52   ;;  %v748_v56 = vpack.c.bf16 %v522_v54, %v521_v53  ;;  %v523_v57 = vld [vmem:[#allocation10 + $0x10] sm:$0xff]  ;;  %v525_v4 = vld [vmem:[#allocation10 + $0x20] sm:$0xff]  ;;  %v526_v5 = vld [vmem:[#allocation10 + $0x28] sm:$0xff]  ;;  %p895_p12 = scmp.ne.s32.totalorder %s617_s23, %s894_s24  ;;  %p900_p0 = scmp.lt.s32.totalorder %s894_s24, %s894_s24 }
  0x61   :  { %v751_v59 = vpack.c.bf16 %v524_v58, %v523_v57 }
  0x62   :  { %p901_p1 = por %p900_p0, %p899_p13 }
  0x64   :  { %p902_p2 = pnand %p901_p1, %p895_p12 }
  0xdb   :  { %v1069_v7 = vpop.permute.xlu0 %107 }
  0xdc   :  { %v110_v8 = vmul.f32 %v1069_v7, %v104_v6  ;;  %v754_v6 = vpack.c.bf16 %v526_v5, %v525_v4 }
  0xde   :  { %v111_v9 = vpack.c.bf16 %v110_v8, %v110_v8  ;;  %v527_v8 = vld [vmem:[#allocation10 + $0x30] sm:$0xff] }
  0xdf   :  { %v218_v24 = vpop.permute.xlu0 %217 }
  0xe0   :  { %677 = vmatmul.mubr.msk.bf16.vlgmr.msra.gmra.mrb[0].mxu0 %vm120_vm1, %v111_v9 }
  0xe1   :  { %694 = vmatprep.mubr.msk.bf16.mxu0 %vm935_vm0, %v934_v3  ;;  %687 = vmatpush3.bf16.msra.mxu0 %v776_v10  ;;  %v517_v10 = vpop.permute.xlu1 %516 }
  0xe2   :  { %688 = vmatprep.subr.bf16.mxu0 %v934_v3 }
  0xe5   :  { %689 = vmatpush3.bf16.msra.mxu0 %v777_v11 }
  0xe6   :  { %690 = vmatprep.subr.bf16.mxu0 %v934_v3 }
  0xe9   :  { %691 = vmatpush3.bf16.msra.mxu0 %v778_v19 }
  0xea   :  { %692 = vmatprep.subr.bf16.mxu0 %v934_v3 }
  0xed   :  { %693 = vmatpush3.bf16.msra.mxu0 %v779_v20 }
  0xee   :  { %716 = vmatprep.subr.bf16.mxu0 %v934_v3 }
 0x1b3   :  { %v158_v12 = vpop.f32.mrb[0].mxu0 }
 0x1b4   :  { %v165_v13 = vpack.c.bf16 %v158_v12, %v158_v12  ;;  %v678_v14 = vpop.f32.mrb[1].mxu0 }
 0x1b5   :  { %v161_v15 = vpop.f32.mrb[2].mxu0 }
 0x1b6   :  { %v679_v16 = vpop.f32.mrb[3].mxu0  ;;  %v172_v17 = vsel %vm170_vm2, %v165_v13, 0 }
 0x1b7   :  { %681 = vmatpush3.bf16.msra.mxu1 %v172_v17  ;;  %v643_v17 = vld [vmem:[%s1148_s9] ss:$0 sm:$0xff] }
 0x1b8   :  { %698 = vmatprep.subr.bf16.mxu1 %v934_v3 }
 0x1ba   :  { %683 = vmatmul.mubr.msk.bf16.vlgmr.msra.gmra.mrb[0].mxu1 %vm166_vm3, %v164_v18 }
 0x1bb   :  { %700 = vmatprep.mubr.msk.bf16.mxu1 %vm935_vm0, %v934_v3 }
 0x28d   :  { %v208_v21 = vpop.f32.mrb[0].mxu1 }
 0x28e   :  { %v214_v22 = vmax.f32 %v208_v21, 0.0  ;;  %v684_v23 = vpop.f32.mrb[1].mxu1 }
 0x28f   :  { %v211_v25 = vpop.f32.mrb[2].mxu1 }
 0x290   :  { %v220_v26 = vmul.f32 %v218_v24, %v214_v22  ;;  %v685_v27 = vpop.f32.mrb[3].mxu1 }
 0x292   :  { %v221_v28 = vpack.c.bf16 %v220_v26, %v220_v26 }
 0x294   :  { %695 = vmatmul.mubr.msk.bf16.vlgmr.msra.gmra.mrb[4].mxu0 %vm254_vm4, %v221_v28 }
 0x295   :  { %718 = vmatprep.mubr.msk.bf16.mxu0 %vm935_vm0, %v934_v3 }
 0x367   :  { %v292_v29 = vpop.f32.mrb[4].mxu0 }
 0x368   :  { %v298_v30 = vpack.c.bf16 %v292_v29, %v292_v29  ;;  %v696_v31 = vpop.f32.mrb[5].mxu0 }
 0x369   :  { %v295_v32 = vpop.f32.mrb[6].mxu0 }
 0x36a   :  { %v300_v33 = vsel %vm170_vm2, %v298_v30, 0  ;;  %v697_v34 = vpop.f32.mrb[7].mxu0 }
 0x36b   :  { %699 = vmatpush3.bf16.msra.mxu1 %v300_v33 }
 0x36c   :  { %704 = vmatprep.subr.bf16.mxu1 %v934_v3 }
 0x36e   :  { %701 = vmatmul.mubr.msk.bf16.vlgmr.msra.gmra.mrb[4].mxu1 %vm166_vm3, %v164_v18 }
 0x36f   :  { %705 = vmatpush3.bf16.msra.mxu1 %v780_v35  ;;  %712 = vmatprep.mubr.msk.bf16.mxu1 %vm935_vm0, %v934_v3 }
 0x370   :  { %706 = vmatprep.subr.bf16.mxu1 %v934_v3 }
 0x373   :  { %707 = vmatpush3.bf16.msra.mxu1 %v781_v36 }
 0x374   :  { %708 = vmatprep.subr.bf16.mxu1 %v934_v3 }
 0x377   :  { %709 = vmatpush3.bf16.msra.mxu1 %v782_v37 }
 0x378   :  { %710 = vmatprep.subr.bf16.mxu1 %v934_v3 }
 0x37b   :  { %711 = vmatpush3.bf16.msra.mxu1 %v783_v38 }
 0x37c   :  { %747 = vmatprep.subr.bf16.mxu1 %v936_v55 }
 0x441   :  { %v336_v39 = vpop.f32.mrb[4].mxu1 }
 0x442   :  { %v342_v40 = vmax.f32 %v336_v39, 0.0  ;;  %v702_v41 = vpop.f32.mrb[5].mxu1 }
 0x443   :  { %v339_v42 = vpop.f32.mrb[6].mxu1 }
 0x444   :  { %v343_v43 = vmul.f32 %v342_v40, %v218_v24  ;;  %v703_v44 = vpop.f32.mrb[7].mxu1 }
 0x446   :  { %v344_v45 = vpack.c.bf16 %v343_v43, %v343_v43 }
 0x448   :  { %713 = vmatmul.mubr.msk.bf16.vlgmr.msra.gmra.mrb[8].mxu1 %vm254_vm4, %v344_v45 }
 0x449   :  { %744 = vmatprep.mubr.msk.f32.mxu1 %vm935_vm0, %v934_v3  ;;  %749 = vmatpush3.bf16.msra.mxu1 %v748_v56 }
 0x44a   :  { %750 = vmatprep.subr.bf16.mxu1 %v936_v55 }
 0x44d   :  { %752 = vmatpush3.bf16.msra.mxu1 %v751_v59 }
 0x44e   :  { %753 = vmatprep.subr.bf16.mxu1 %v936_v55 }
 0x451   :  { %755 = vmatpush3.bf16.msra.mxu1 %v754_v6 }
 0x452   :  { %756 = vmatprep.subr.bf16.mxu1 %v936_v55 }
 0x51b   :  { %v414_v46 = vpop.f32.mrb[8].mxu1 }
 0x51c   :  { %v420_v47 = vpack.c.bf16 %v414_v46, %v414_v46  ;;  %v714_v48 = vpop.f32.mrb[9].mxu1 }
 0x51d   :  { %v417_v49 = vpop.f32.mrb[10].mxu1 }
 0x51e   :  { %v422_v50 = vsel %vm170_vm2, %v420_v47, 0  ;;  %v715_v51 = vpop.f32.mrb[11].mxu1 }
 0x51f   :  { %717 = vmatpush3.bf16.msra.mxu0 %v422_v50 }
 0x520   :  { %722 = vmatprep.subr.bf16.mxu0 %v934_v3 }
 0x522   :  { %719 = vmatmul.mubr.msk.bf16.vlgmr.msra.gmra.mrb[8].mxu0 %vm166_vm3, %v164_v18 }
 0x523   :  { %724 = vmatprep.mubr.msk.bf16.mxu0 %vm935_vm0, %v934_v3  ;;  %v465_v3 = vld [vmem:[%s1145_s6] sm:$0xf] }
 0x5f5   :  { %v458_v60 = vpop.f32.mrb[8].mxu0 }
 0x5f6   :  { %v464_v61 = vmul.f32 %v458_v60, %v1069_v7  ;;  %v720_v62 = vpop.f32.mrb[9].mxu0  ;;  %v528_v7 = vld [vmem:[#allocation10 + $0x38] sm:$0xff] }
 0x5f7   :  { %v461_v63 = vpop.f32.mrb[10].mxu0  ;;  %v757_v9 = vpack.c.bf16 %v528_v7, %v527_v8 }
 0x5f8   :  { %v466_v0 = vpack.c.bf16 %v464_v61, %v464_v61  ;;  %v721_v1 = vpop.f32.mrb[11].mxu0 }
 0x5f9   :  { %758 = vmatpush3.bf16.msra.mxu1 %v757_v9 }
 0x5fa   :  { %v471_v2 = vsel %vm170_vm2, %v466_v0, 0 }
 0x5fb   :  { %723 = vmatpush3.bf16.msra.mxu0 %v471_v2 }
 0x5fe   :  { %725 = vmatmul.mubr.msk.bf16.vlgmr.msra.gmra.mrb[12].mxu0 %vm166_vm3, %v465_v3 }
 0x6d1   :  { %v507_v11 = vpop.f32.mrb[12].mxu0 }
 0x6d2   :  { %v726_v12 = vpop.f32.mrb[13].mxu0  ;;  %v519_v13 = vmul.f32 %v517_v10, %v507_v11 }
 0x6d3   :  { %v510_v14 = vpop.f32.mrb[14].mxu0 }
 0x6d4   :  { %v520_v15 = vmax.f32 %v519_v13, 0.0  ;;  %v727_v16 = vpop.f32.mrb[15].mxu0 }
 0x6d6   :  { %745 = vmatmul.mubr.msk.f32.vlgmr.msra.gmra.mrb[12].mxu1 %vm254_vm4, %v520_v15 }
 0x7a9   :  { %v605_v18 = vpop.f32.mrb[12].mxu1 }
 0x7aa   :  { %v606_v19 = vadd.f32 %v643_v17, %v605_v18  ;;  %v746_v20 = vpop.f32.mrb[13].mxu1 }
 0x7ac   :  { %609 = vst [vmem:[#allocation11] sm:$0xff] %v606_v19 }
 0x7ad   :  { %905 = shalt.err (!%p902_p2)
}
 0x7ae   :  { %s906_s29 = scalar_lea.hbm %s1149_s10, 128 }
 0x7af   :  { %p907_p3 = scmp.ne.s32.totalorder %s1149_s10, %s906_s29  ;;  %p910_p4 = scmp.lt.u32.totalorder %s906_s29, %s1149_s10 }
 0x7b1   :  { %p912_p5 = pnand %p910_p4, %p907_p3 }
 0x7b3   :  { %915 = shalt.err (!%p912_p5)
}
 0x7b4   :  { %619 = dma.vmem_to_hbm [thread:$0]  %s617_s23, 128, %s1149_s10, [#allocation4]  }
 0x7b5   :  { %922 = dma.done.wait [#allocation4], 128  }
 0x7b6   :  { %923 = vsyncadd [#allocation4], 4294967168 }
 0x7b7   :  { %623 = vsyncpa [#allocation3], 1 }
 0x7b8   :  { %624 = vsyncpa [#allocation6], 1 }
 0x7b9   :  { %625 = vsyncpa [#allocation9], 1 }
 0x7ba   :  { %626 = vsyncpa [#allocation4], 1 }

</bundles_post_ra>
